<compile_context>
chip_gen: v6e
topology: v6e:2x2x1
jax: 0.10.0
libtpu: 0.0.40
codegen_flags: <defaults>
</compile_context>

<pallas_src>
import jax
import jax.numpy as jnp
from jax.experimental import pallas as pl
from jax.experimental.pallas import tpu as pltpu


def _round_up(a: int, b: int) -> int:
    return (a + b - 1) // b * b


def brain_neuron_kernel(x_ref, p_ref, o_ref):
    """Elementwise activation on a (tm, tn) tile.

    p_ref is a packed (5, tn) parameter block:
      row 0: thresholds, row 1: parm1, row 2: parm2,
      row 3: parm3,      row 4: c = parm5 - parm2*parm4 (folded in wrapper).
    """
    x = x_ref[...]                       # (tm, tn)
    thr = p_ref[0:1, :]
    p1 = p_ref[1:2, :]
    p2 = p_ref[2:3, :]
    p3 = p_ref[3:4, :]
    c = p_ref[4:5, :]

    y = jnp.where(x < 0, p1 * x, x)
    out = jnp.where(y >= thr, p2 * y + c, p3 * y)
    if out.dtype != o_ref.dtype:
        out = out.astype(o_ref.dtype)
    o_ref[...] = out


_TARGET_TILE_BYTES = 1 << 20     # ~1 MiB per x tile (85%+ of HBM roofline on v6e)
_FALLBACK_TN = 4096              # column tile if a full row is too wide for VMEM


def _pick_tm(M: int, tn: int, itemsize: int) -> int:
    if M <= 8:
        return M                                   # full (ragged) extent, single block
    tm = max(8, (_TARGET_TILE_BYTES // (tn * itemsize)) // 8 * 8)
    tm = min(tm, _round_up(M, 8))
    if -(-M // tm) < 2:                            # >= 2 row blocks for megacore/2-TC
        tm = max(8, _round_up(-(-M // 2), 8))
    return tm


def brain_neuron_activation(x, thresholds, parm1, parm2, parm3, parm4, parm5):
    """x: (..., N) float; per-neuron params: (N,).  Returns same shape as x."""
    orig_shape = x.shape
    N = thresholds.shape[0]
    assert orig_shape[-1] == N, "last dim of x must equal num_neurons"

    x2 = x.reshape(-1, N)                          # metadata only, no copy
    M = x2.shape[0]

    # Fold parm5 - parm2*parm4 once on (N,) vectors; pack params into one array.
    params = jnp.stack(
        [thresholds, parm1, parm2, parm3, parm5 - parm2 * parm4], axis=0)  # (5, N)

    itemsize = max(jnp.dtype(x.dtype).itemsize, 4)  # size tiles for f32 intermediates

    full_row = (8 * N * itemsize) <= 2 * _TARGET_TILE_BYTES
    tn = N if full_row else min(_FALLBACK_TN, _round_up(N, 128))
    tm = _pick_tm(M, tn, itemsize)

    gm = pl.cdiv(M, tm)
    gn = pl.cdiv(N, tn)

    # Double-buffered x + out tiles, resident params, plus headroom.
    tile_bytes = tm * tn * itemsize
    footprint = 4 * tile_bytes + 2 * 5 * tn * 4
    vmem_limit = min(max(2 * footprint + (4 << 20), 16 << 20), 32 << 20)

    if gn == 1:
        # 1-D grid over rows; the param block index is constant -> DMA'd once.
        grid = (gm,)
        in_specs = [
            pl.BlockSpec((tm, tn), lambda i: (i, 0)),    # x tile
            pl.BlockSpec((5, tn), lambda i: (0, 0)),     # packed params (resident)
        ]
        out_specs = pl.BlockSpec((tm, tn), lambda i: (i, 0))
        dims = ("parallel",)
    else:
        # Column axis OUTER so params are only re-fetched when the column changes.
        grid = (gn, gm)
        in_specs = [
            pl.BlockSpec((tm, tn), lambda j, i: (i, j)),
            pl.BlockSpec((5, tn), lambda j, i: (0, j)),
        ]
        out_specs = pl.BlockSpec((tm, tn), lambda j, i: (i, j))
        dims = ("parallel", "parallel")

    out = pl.pallas_call(
        brain_neuron_kernel,
        out_shape=jax.ShapeDtypeStruct((M, N), x.dtype),
        grid_spec=pltpu.PrefetchScalarGridSpec(
            num_scalar_prefetch=0,
            grid=grid,
            in_specs=in_specs,
            out_specs=out_specs,
        ),
        compiler_params=pltpu.CompilerParams(
            dimension_semantics=dims,
            vmem_limit_bytes=int(vmem_limit),
        ),
        cost_estimate=pl.CostEstimate(
            flops=8 * M * N,
            transcendentals=0,
            bytes_accessed=2 * M * N * jnp.dtype(x.dtype).itemsize + 5 * N * 4,
        ),
    )(x2, params)

    return out.reshape(orig_shape)


def _reference(x, thresholds, parm1, parm2, parm3, parm4, parm5):
    y = jnp.where(x < 0, parm1 * x, x)
    return jnp.where(y >= thresholds, parm5 + parm2 * (y - parm4), parm3 * y)


if __name__ == "__main__":
    key = jax.random.PRNGKey(0)
    kx, kt, k1, k2, k3, k4, k5 = jax.random.split(key, 7)

    # Small, module-consistent shape: a (batch, num_neurons) activation.
    num_neurons = 128
    batch = 8
    x = jax.random.normal(kx, (batch, num_neurons), jnp.float32)
    thresholds = jax.random.uniform(kt, (num_neurons,), jnp.float32)
    parm1 = jax.random.uniform(k1, (num_neurons,), jnp.float32)
    parm2 = jax.random.uniform(k2, (num_neurons,), jnp.float32)
    parm3 = jax.random.uniform(k3, (num_neurons,), jnp.float32)
    parm4 = jax.random.uniform(k4, (num_neurons,), jnp.float32)
    parm5 = jax.random.uniform(k5, (num_neurons,), jnp.float32)

    out = brain_neuron_activation(x, thresholds, parm1, parm2, parm3, parm4, parm5)
    out = jax.block_until_ready(out)
    ref = _reference(x, thresholds, parm1, parm2, parm3, parm4, parm5)
    assert out.shape == x.shape
    assert jnp.allclose(out, ref, atol=1e-5, rtol=1e-5)

    # Also exercise the no-pad ragged-edge path (M%8 != 0, N%128 != 0).
    nr = 100
    xr = jax.random.normal(kx, (10, nr), jnp.float32)
    pr = [jax.random.uniform(k, (nr,), jnp.float32) for k in (kt, k1, k2, k3, k4, k5)]
    out_r = jax.block_until_ready(brain_neuron_activation(xr, *pr))
    ref_r = _reference(xr, *pr)
    assert out_r.shape == xr.shape
    assert jnp.allclose(out_r, ref_r, atol=1e-5, rtol=1e-5)

    print("KERNEL_OK")
</pallas_src>

<mosaic_0001>
module attributes {stable_mosaic.version = 11 : i64} {
  func.func @brain_neuron_kernel(%arg0: i32, %arg1: memref<8x128xf32, #tpu.memory_space<vmem>>, %arg2: memref<5x128xf32, #tpu.memory_space<vmem>>, %arg3: memref<8x128xf32, #tpu.memory_space<vmem>>) attributes {dimension_semantics = [#tpu.dimension_semantics<parallel>], iteration_bounds = array<i64: 1>, scalar_prefetch = 0 : i64, scratch_operands = 0 : i64, tpu.core_type = #tpu.core_type<tc>, window_params = [{transform_indices = @transform_0, window_bounds = array<i64: 8, 128>}, {pipeline_mode = #tpu.pipeline_mode<synchronous>, transform_indices = @transform_1, window_bounds = array<i64: 5, 128>}, {transform_indices = @transform_2, window_bounds = array<i64: 8, 128>}]} {
    %c0 = arith.constant 0 : index
    %c0_0 = arith.constant 0 : index
    %0 = vector.load %arg1[%c0, %c0_0] : memref<8x128xf32, #tpu.memory_space<vmem>>, vector<8x128xf32>
    %c0_1 = arith.constant 0 : index
    %c0_2 = arith.constant 0 : index
    %1 = vector.load %arg2[%c0_1, %c0_2] : memref<5x128xf32, #tpu.memory_space<vmem>>, vector<1x128xf32>
    %c1 = arith.constant 1 : index
    %c0_3 = arith.constant 0 : index
    %2 = vector.load %arg2[%c1, %c0_3] : memref<5x128xf32, #tpu.memory_space<vmem>>, vector<1x128xf32>
    %c2 = arith.constant 2 : index
    %c0_4 = arith.constant 0 : index
    %3 = vector.load %arg2[%c2, %c0_4] : memref<5x128xf32, #tpu.memory_space<vmem>>, vector<1x128xf32>
    %c3 = arith.constant 3 : index
    %c0_5 = arith.constant 0 : index
    %4 = vector.load %arg2[%c3, %c0_5] : memref<5x128xf32, #tpu.memory_space<vmem>>, vector<1x128xf32>
    %c4 = arith.constant 4 : index
    %c0_6 = arith.constant 0 : index
    %5 = vector.load %arg2[%c4, %c0_6] : memref<5x128xf32, #tpu.memory_space<vmem>>, vector<1x128xf32>
    %cst = arith.constant 0.000000e+00 : f32
    %6 = vector.broadcast %cst : f32 to vector<8x128xf32>
    %7 = arith.cmpf olt, %0, %6 : vector<8x128xf32>
    %8 = vector.broadcast %2 : vector<1x128xf32> to vector<8x128xf32>
    %9 = arith.mulf %8, %0 : vector<8x128xf32>
    %10 = arith.select %7, %9, %0 : vector<8x128xi1>, vector<8x128xf32>
    %11 = vector.broadcast %1 : vector<1x128xf32> to vector<8x128xf32>
    %12 = arith.cmpf oge, %10, %11 : vector<8x128xf32>
    %13 = vector.broadcast %3 : vector<1x128xf32> to vector<8x128xf32>
    %14 = arith.mulf %13, %10 : vector<8x128xf32>
    %15 = vector.broadcast %5 : vector<1x128xf32> to vector<8x128xf32>
    %16 = arith.addf %14, %15 : vector<8x128xf32>
    %17 = vector.broadcast %4 : vector<1x128xf32> to vector<8x128xf32>
    %18 = arith.mulf %17, %10 : vector<8x128xf32>
    %19 = arith.select %12, %16, %18 : vector<8x128xi1>, vector<8x128xf32>
    %c0_7 = arith.constant 0 : index
    %c0_8 = arith.constant 0 : index
    %20 = vector.load %arg3[%c0_7, %c0_8] : memref<8x128xf32, #tpu.memory_space<vmem>>, vector<8x128xf32>
    tpu.vector_store %arg3[%c0_7, %c0_8], %19 {strides = array<i32>} : memref<8x128xf32, #tpu.memory_space<vmem>>, vector<8x128xf32>,
    return
  }
  func.func @transform_0(%arg0: i32) -> (i32, i32) {
    %c0_i32 = arith.constant 0 : i32
    %c0_i32_0 = arith.constant 0 : i32
    return %arg0, %c0_i32 : i32, i32
  }
  func.func @transform_1(%arg0: i32) -> (i32, i32) {
    %c0_i32 = arith.constant 0 : i32
    %c0_i32_0 = arith.constant 0 : i32
    %c0_i32_1 = arith.constant 0 : i32
    return %c0_i32, %c0_i32_0 : i32, i32
  }
  func.func @transform_2(%arg0: i32) -> (i32, i32) {
    %c0_i32 = arith.constant 0 : i32
    %c0_i32_0 = arith.constant 0 : i32
    return %arg0, %c0_i32 : i32, i32
  }
}

</mosaic_0001>

<bundles_post_ra>
// kernel: tpu_custom_call.1
= control target key start
LH: loop header
LB: loop body
LE: loop exit
PB: predicated region body
PF: predicated region fallthrough
CT: control target
= control target key end

     0   :  { %7 = vsyncpa [#allocation3], 0  ;;  %s188_s0 = inlined_call_operand.hbm [shape: f32[8,128], index: 0, kind: input, shape index: {}]   ;;  %s189_s1 = inlined_call_operand.hbm [shape: f32[5,128], index: 1, kind: input, shape index: {}]   ;;  %s190_s2 = inlined_call_operand.hbm [shape: f32[8,128], index: 2, kind: output, shape index: {}]  }
   0x1   :  { %8 = vsyncpa [#allocation6], 0 }
   0x2   :  { %9 = vsyncpa [#allocation4], 0  ;;  %s161_s9 = smov [#allocation2]   ;;  %s162_s11 = smov [#allocation5]  }
   0x3   :  { %s16_s10 = sshll.u32 %s161_s9, 4  ;;  %s26_s12 = sshll.u32 %s162_s11, 4  ;;  %s17_s10 = int_to_ptr.vmem [resolvable:$true] %s16_s10  ;;  %s27_s12 = int_to_ptr.vmem [resolvable:$true] %s26_s12 }
   0x4   :  { %s103_s13 = scalar_lea.vmem %s17_s10, 128  ;;  %p108_p1 = scmp.lt.s32.totalorder %s17_s10, %s17_s10 }
   0x5   :  { %p104_p0 = scmp.ne.s32.totalorder %s17_s10, %s103_s13  ;;  %p109_p2 = scmp.lt.s32.totalorder %s103_s13, %s103_s13 }
   0x7   :  { %p110_p3 = por %p109_p2, %p108_p1 }
   0x9   :  { %p111_p4 = pnand %p110_p3, %p104_p0 }
   0xb   :  { %114 = shalt.err (!%p111_p4)
}
   0xc   :  { %19 = dma.hbm_to_vmem [thread:$0]  %s188_s0, 128, %s17_s10, [#allocation3]  }
   0xd   :  { %s123_s16 = scalar_lea.vmem %s27_s12, 128  ;;  %p128_p6 = scmp.lt.s32.totalorder %s27_s12, %s27_s12 }
   0xe   :  { %p124_p5 = scmp.ne.s32.totalorder %s27_s12, %s123_s16  ;;  %p129_p7 = scmp.lt.s32.totalorder %s123_s16, %s123_s16 }
  0x10   :  { %p130_p8 = por %p129_p7, %p128_p6 }
  0x12   :  { %p131_p9 = pnand %p130_p8, %p124_p5 }
  0x14   :  { %134 = shalt.err (!%p131_p9)
}
  0x15   :  { %29 = dma.hbm_to_vmem [thread:$0]  %s189_s1, 128, %s27_s12, [#allocation6]  }
  0x16   :  { %155 = dma.done.wait [#allocation3], 128  }
  0x17   :  { %156 = vsyncadd [#allocation3], 4294967168 }
  0x18   :  { %157 = dma.done.wait [#allocation6], 128  }
  0x19   :  { %158 = vsyncadd [#allocation6], 4294967168  ;;  %v36_v0 = vld [vmem:[#allocation2] sm:$0xff]  ;;  %v87_v1 = vld [vmem:[#allocation5 + $0x1] ss:$0 sm:$0xff]  ;;  %s163_s0 = smov [#allocation7]  }
  0x1a   :  { %v89_v2 = vld [vmem:[#allocation5 + $0x2] ss:$0 sm:$0xff]  ;;  %v91_v3 = vld [vmem:[#allocation5 + $0x3] ss:$0 sm:$0xff]  ;;  %v47_v4 = vmul.f32 %v87_v1, %v36_v0  ;;  %v88_v5 = vld [vmem:[#allocation5] ss:$0 sm:$0xff] }
  0x1b   :  { %vm42_vm0 = vcmp.lt.f32.partialorder %v36_v0, 0.0  ;;  %v90_v6 = vld [vmem:[#allocation5 + $0x4] ss:$0 sm:$0xff]  ;;  %s77_s19 = sshll.u32 %s163_s0, 4  ;;  %s78_s19 = int_to_ptr.vmem [resolvable:$true] %s77_s19 }
  0x1c   :  { %v48_v7 = vsel %vm42_vm0, %v47_v4, %v36_v0  ;;  %s135_s1 = scalar_lea.vmem %s78_s19, 128  ;;  %p140_p11 = scmp.lt.s32.totalorder %s78_s19, %s78_s19 }
  0x1d   :  { %v58_v8 = vmul.f32 %v89_v2, %v48_v7  ;;  %v68_v9 = vmul.f32 %v91_v3, %v48_v7  ;;  %vm53_vm1 = vcmp.ge.f32.partialorder %v48_v7, %v88_v5  ;;  %p136_p10 = scmp.ne.s32.totalorder %s78_s19, %s135_s1  ;;  %p141_p12 = scmp.lt.s32.totalorder %s135_s1, %s135_s1 }
  0x1f   :  { %v63_v10 = vadd.f32 %v90_v6, %v58_v8  ;;  %p142_p13 = por %p141_p12, %p140_p11 }
  0x21   :  { %v69_v11 = vsel %vm53_vm1, %v63_v10, %v68_v9  ;;  %p143_p0 = pnand %p142_p13, %p136_p10 }
  0x22   :  { %70 = vst [vmem:[#allocation7] sm:$0xff] %v69_v11 }
  0x23   :  { %146 = shalt.err (!%p143_p0)
}
  0x24   :  { %80 = dma.vmem_to_hbm [thread:$0]  %s78_s19, 128, %s190_s2, [#allocation4]  }
  0x25   :  { %159 = dma.done.wait [#allocation4], 128  }
  0x26   :  { %160 = vsyncadd [#allocation4], 4294967168 }
  0x27   :  { %84 = vsyncpa [#allocation3], 1 }
  0x28   :  { %85 = vsyncpa [#allocation6], 1 }
  0x29   :  { %86 = vsyncpa [#allocation4], 1 }

</bundles_post_ra>
